<compile_context>
chip_gen: v7x
topology: tpu7x:2x2x1
jax: 0.10.0
libtpu: 0.0.40
codegen_flags: <defaults>
</compile_context>

<pallas_src>
import functools

import jax
import jax.numpy as jnp
from jax.experimental import pallas as pl
from jax.experimental.pallas import tpu as pltpu


def _sdpa_kernel(q_ref, k_ref, v_ref, out_ref, attn_ref, *, inv_scale):
    # Blocks per grid step: q (G, TQ, D), k (G, Lk, D), v (G, Lk, Dv).
    # Fold the softmax temperature into q before the matmul.
    q = q_ref[...] * inv_scale
    k = k_ref[...]
    v = v_ref[...]

    # Batched q @ k^T: contract last dim of both operands (no explicit k.T),
    # batch over the G head dimension, f32 accumulation on the MXU.
    s = jax.lax.dot_general(
        q, k,
        dimension_numbers=(((2,), (2,)), ((0,), (0,))),
        preferred_element_type=jnp.float32,
    )  # (G, TQ, Lk)

    # Numerically stable softmax along Lk (full Lk row resident -> exact).
    m = jnp.max(s, axis=-1, keepdims=True)
    p = jnp.exp(s - m)
    denom = jnp.sum(p, axis=-1, keepdims=True)            # (G, TQ, 1)
    # EUP approximate reciprocal + one Newton refinement (denom is tiny, so
    # the refinement is essentially free; rel. error ~1e-7 afterwards).
    r = pl.reciprocal(denom, approx=True)
    r = r * (2.0 - denom * r)
    attn = p * r                                           # (G, TQ, Lk) f32

    # Single cast, reused for both the store and the second matmul.
    attn_lp = attn.astype(v.dtype)
    if attn_ref.dtype == v.dtype:
        attn_ref[...] = attn_lp
    else:
        attn_ref[...] = attn.astype(attn_ref.dtype)

    # output = attn @ v (batched), f32 accumulation.
    out = jax.lax.dot_general(
        attn_lp, v,
        dimension_numbers=(((2,), (1,)), ((0,), (0,))),
        preferred_element_type=jnp.float32,
    )  # (G, TQ, Dv)
    out_ref[...] = out.astype(out_ref.dtype)


def _largest_divisor_leq(n, cap):
    cap = int(max(1, min(n, cap)))
    for d in range(cap, 0, -1):
        if n % d == 0:
            return d
    return 1


def _tpu_params():
    """Best-effort per-generation parameters: (vmem_limit_bytes, prefer_tq, two_tc)."""
    try:
        kind = jax.devices()[0].device_kind.lower()
    except Exception:
        kind = ""
    try:
        vmem_cap = int(pltpu.get_tpu_info().vmem_capacity_bytes)
    except Exception:
        vmem_cap = 64 * 1024 * 1024          # conservative (v7x-sized) fallback
    # ~3/4 of physical VMEM, capped at 96 MiB: -> ~48 MiB on v7x (64 MiB),
    # ~96 MiB on v5e/v6e (128 MiB).
    vmem_limit = min(max(vmem_cap * 3 // 4, 32 * 1024 * 1024), 96 * 1024 * 1024)
    # v5e MXU is 128 rows; v6e/v7x are 256 rows -> TQ=256 doubles MXU occupancy.
    prefer_tq = 128 if "v5" in kind else 256
    # Only v7x has 2 TensorCores per chip; elsewhere splitting the grid for
    # "megacore" is pure overhead.
    two_tc = ("v7" in kind) if kind else True
    return vmem_limit, prefer_tq, two_tc


def scale_dot_product_attention(q, k, v, scale, mask=None, *,
                                attn_dtype=None, group_size=None, q_tile=None):
    """Pallas implementation of ScaleDotProductAttention.forward (eval mode).

    q: (B, H, Lq, D), k: (B, H, Lk, D), v: (B, H, Lk, Dv)
    Returns (output, attn) with shapes (B, H, Lq, Dv), (B, H, Lq, Lk).
    `mask` is accepted but ignored (masked_fill in the reference is a no-op).
    `attn_dtype`: dtype of the returned attention matrix.  attn writeback
    dominates HBM traffic (Lq*Lk per head), so callers that can accept bf16
    probabilities should pass jnp.bfloat16 for ~2x less writeback.  Default
    keeps q.dtype to preserve the reference module's output exactly.
    """
    del mask

    B, H, Lq, D = q.shape
    Lk = k.shape[2]
    Dv = v.shape[3]
    BH = B * H

    qf = q.reshape(BH, Lq, D)
    kf = k.reshape(BH, Lk, D)
    vf = v.reshape(BH, Lk, Dv)

    if attn_dtype is None:
        attn_dtype = q.dtype

    vmem_limit, prefer_tq, two_tc = _tpu_params()
    block_budget = vmem_limit // 2

    in_b = jnp.dtype(q.dtype).itemsize
    out_b = jnp.dtype(q.dtype).itemsize
    attn_b = jnp.dtype(attn_dtype).itemsize

    def est_bytes(g, tq):
        # Streamed tiles are double-buffered by the Pallas pipeline.
        stream = g * (tq * D * in_b + Lk * D * in_b + Lk * Dv * in_b
                      + tq * Dv * out_b + tq * Lk * attn_b)
        # f32 intermediates (scores, exp, normalized attn, scaled q, out acc)
        # live once in the compute stage (not double-buffered).
        interm = g * (3 * tq * Lk + tq * D + tq * Dv) * 4
        return 2 * stream + interm

    # ---- q tile -------------------------------------------------------------
    if q_tile is None:
        q_tile = Lq if Lq <= prefer_tq else prefer_tq
        # Shrink only if even a single-group tile overflows the budget (huge
        # Lk); never below one sublane's worth of rows.
        while q_tile > 8 and est_bytes(1, q_tile) > block_budget:
            q_tile = max(8, q_tile // 2)
    TQ = int(q_tile)
    # Ragged last tile handled by Pallas block padding; softmax + matmuls are
    # row-independent in q and OOB output rows are dropped on writeback.
    n_q = pl.cdiv(Lq, TQ)

    # ---- heads (B*H slices) per grid step ------------------------------------
    if group_size is None:
        per_g = max(1, est_bytes(1, TQ))
        max_g = max(1, block_budget // per_g)           # est_bytes is linear in g
        G = _largest_divisor_leq(BH, max_g)
        # v7x megacore: keep >=2 total grid steps so both TensorCores get work.
        if two_tc and (BH // G) * n_q < 2 and BH >= 2:
            G = _largest_divisor_leq(BH, BH // 2)
    else:
        G = int(group_size)
    assert BH % G == 0, "group_size must divide B*H"

    # Grid order is load-bearing: qi must stay innermost (fastest) and the K/V
    # index_maps must stay qi-invariant so the (G,Lk,*) blocks are NOT
    # re-DMA'd for every q tile.  Do not swap the axes.
    grid = (BH // G, n_q)

    kernel = functools.partial(_sdpa_kernel, inv_scale=1.0 / float(scale))

    out_f, attn_f = pl.pallas_call(
        kernel,
        out_shape=(
            jax.ShapeDtypeStruct((BH, Lq, Dv), q.dtype),
            jax.ShapeDtypeStruct((BH, Lq, Lk), attn_dtype),
        ),
        grid_spec=pltpu.PrefetchScalarGridSpec(
            num_scalar_prefetch=0,
            grid=grid,
            in_specs=[
                pl.BlockSpec((G, TQ, D), lambda g, qi: (g, qi, 0)),
                pl.BlockSpec((G, Lk, D), lambda g, qi: (g, 0, 0)),   # qi-invariant
                pl.BlockSpec((G, Lk, Dv), lambda g, qi: (g, 0, 0)),  # qi-invariant
            ],
            out_specs=[
                pl.BlockSpec((G, TQ, Dv), lambda g, qi: (g, qi, 0)),
                pl.BlockSpec((G, TQ, Lk), lambda g, qi: (g, qi, 0)),
            ],
        ),
        compiler_params=pltpu.CompilerParams(
            # g is "parallel" (megacore split lands here, keeping each core's
            # K/V resident); qi is "arbitrary".
            dimension_semantics=("parallel", "arbitrary"),
            vmem_limit_bytes=int(vmem_limit),
        ),
    )(qf, kf, vf)

    return out_f.reshape(B, H, Lq, Dv), attn_f.reshape(B, H, Lq, Lk)


def _reference(q, k, v, scale):
    s = jnp.einsum("bhqd,bhkd->bhqk", q, k) / scale
    attn = jax.nn.softmax(s, axis=-1)
    out = jnp.einsum("bhqk,bhkd->bhqd", attn, v)
    return out, attn


if __name__ == "__main__":
    # Small deterministic inputs consistent with the module's forward.
    B, H, Lq, Lk, D, Dv = 2, 4, 8, 8, 32, 32
    scale = float(D) ** 0.5  # temperature = sqrt(d_k), as typically passed in

    key = jax.random.PRNGKey(0)
    kq, kk, kv = jax.random.split(key, 3)
    q = jax.random.normal(kq, (B, H, Lq, D), dtype=jnp.float32)
    k = jax.random.normal(kk, (B, H, Lk, D), dtype=jnp.float32)
    v = jax.random.normal(kv, (B, H, Lk, Dv), dtype=jnp.float32)

    out, attn = scale_dot_product_attention(q, k, v, scale)
    out = jax.block_until_ready(out)
    attn = jax.block_until_ready(attn)

    ref_out, ref_attn = _reference(q, k, v, scale)
    # Slightly relaxed tolerance to absorb the (tiny, ~1e-7 rel) error from
    # the Newton-refined approximate reciprocal in the softmax denominator.
    assert jnp.allclose(out, ref_out, atol=1e-4, rtol=1e-4)
    assert jnp.allclose(attn, ref_attn, atol=1e-4, rtol=1e-4)

    print("KERNEL_OK")
</pallas_src>

<mosaic_0001>
module attributes {stable_mosaic.version = 11 : i64} {
  func.func @_sdpa_kernel(%arg0: i32, %arg1: i32, %arg2: memref<8x8x32xf32, #tpu.memory_space<vmem>>, %arg3: memref<8x8x32xf32, #tpu.memory_space<vmem>>, %arg4: memref<8x8x32xf32, #tpu.memory_space<vmem>>, %arg5: memref<8x8x32xf32, #tpu.memory_space<vmem>>, %arg6: memref<8x8x8xf32, #tpu.memory_space<vmem>>) attributes {dimension_semantics = [#tpu.dimension_semantics<parallel>, #tpu.dimension_semantics<arbitrary>], iteration_bounds = array<i64: 1, 1>, scalar_prefetch = 0 : i64, scratch_operands = 0 : i64, tpu.core_type = #tpu.core_type<tc>, window_params = [{transform_indices = @transform_0, window_bounds = array<i64: 8, 8, 32>}, {transform_indices = @transform_1, window_bounds = array<i64: 8, 8, 32>}, {transform_indices = @transform_2, window_bounds = array<i64: 8, 8, 32>}, {transform_indices = @transform_3, window_bounds = array<i64: 8, 8, 32>}, {transform_indices = @transform_4, window_bounds = array<i64: 8, 8, 8>}]} {
    %c0 = arith.constant 0 : index
    %c0_0 = arith.constant 0 : index
    %c0_1 = arith.constant 0 : index
    %0 = vector.load %arg2[%c0, %c0_0, %c0_1] : memref<8x8x32xf32, #tpu.memory_space<vmem>>, vector<8x8x32xf32>
    %cst = arith.constant 0.176776692 : f32
    %1 = vector.broadcast %cst : f32 to vector<8x8x32xf32>
    %2 = arith.mulf %0, %1 : vector<8x8x32xf32>
    %c0_2 = arith.constant 0 : index
    %c0_3 = arith.constant 0 : index
    %c0_4 = arith.constant 0 : index
    %3 = vector.load %arg3[%c0_2, %c0_3, %c0_4] : memref<8x8x32xf32, #tpu.memory_space<vmem>>, vector<8x8x32xf32>
    %c0_5 = arith.constant 0 : index
    %c0_6 = arith.constant 0 : index
    %c0_7 = arith.constant 0 : index
    %4 = vector.load %arg4[%c0_5, %c0_6, %c0_7] : memref<8x8x32xf32, #tpu.memory_space<vmem>>, vector<8x8x32xf32>
    %cst_8 = arith.constant dense<0.000000e+00> : vector<8x8x8xf32>
    %5 = tpu.matmul %2, %3, %cst_8 {dimension_numbers = #tpu.dot_dimension_numbers<[2], [2], [1], [1], [0, 0, 0, 1, 1, 1], [0], [0]>} : vector<8x8x32xf32>, vector<8x8x32xf32>, vector<8x8x8xf32> -> vector<8x8x8xf32>
    %cst_9 = arith.constant dense<0xFF800000> : vector<8x8xf32>
    %6 = vector.multi_reduction <maximumf>, %5, %cst_9 [2] : vector<8x8x8xf32> to vector<8x8xf32>
    %7 = vector.shape_cast %6 : vector<8x8xf32> to vector<8x8x1xf32>
    %8 = vector.broadcast %7 : vector<8x8x1xf32> to vector<8x8x8xf32>
    %9 = arith.subf %5, %8 : vector<8x8x8xf32>
    %10 = math.exp %9 : vector<8x8x8xf32>
    %cst_10 = arith.constant dense<0.000000e+00> : vector<8x8xf32>
    %11 = vector.multi_reduction <add>, %10, %cst_10 [2] : vector<8x8x8xf32> to vector<8x8xf32>
    %12 = vector.shape_cast %11 : vector<8x8xf32> to vector<8x8x1xf32>
    %13 = tpu.reciprocal %12 {approx = true} : vector<8x8x1xf32> -> vector<8x8x1xf32>
    %14 = arith.mulf %12, %13 : vector<8x8x1xf32>
    %cst_11 = arith.constant 2.000000e+00 : f32
    %15 = vector.broadcast %cst_11 : f32 to vector<8x8x1xf32>
    %16 = arith.subf %15, %14 : vector<8x8x1xf32>
    %17 = arith.mulf %13, %16 : vector<8x8x1xf32>
    %18 = vector.broadcast %17 : vector<8x8x1xf32> to vector<8x8x8xf32>
    %19 = arith.mulf %10, %18 : vector<8x8x8xf32>
    %c0_12 = arith.constant 0 : index
    %c0_13 = arith.constant 0 : index
    %c0_14 = arith.constant 0 : index
    %20 = vector.load %arg6[%c0_12, %c0_13, %c0_14] : memref<8x8x8xf32, #tpu.memory_space<vmem>>, vector<8x8x8xf32>
    tpu.vector_store %arg6[%c0_12, %c0_13, %c0_14], %19 {strides = array<i32>} : memref<8x8x8xf32, #tpu.memory_space<vmem>>, vector<8x8x8xf32>,
    %cst_15 = arith.constant dense<0.000000e+00> : vector<8x8x32xf32>
    %21 = tpu.matmul %19, %4, %cst_15 {dimension_numbers = #tpu.dot_dimension_numbers<[2], [1], [1], [2], [0, 0, 0, 1, 1, 2], [0], [0]>} : vector<8x8x8xf32>, vector<8x8x32xf32>, vector<8x8x32xf32> -> vector<8x8x32xf32>
    %c0_16 = arith.constant 0 : index
    %c0_17 = arith.constant 0 : index
    %c0_18 = arith.constant 0 : index
    %22 = vector.load %arg5[%c0_16, %c0_17, %c0_18] : memref<8x8x32xf32, #tpu.memory_space<vmem>>, vector<8x8x32xf32>
    tpu.vector_store %arg5[%c0_16, %c0_17, %c0_18], %21 {strides = array<i32>} : memref<8x8x32xf32, #tpu.memory_space<vmem>>, vector<8x8x32xf32>,
    return
  }
  func.func @transform_0(%arg0: i32, %arg1: i32) -> (i32, i32, i32) {
    %c0_i32 = arith.constant 0 : i32
    %c0_i32_0 = arith.constant 0 : i32
    return %arg0, %arg1, %c0_i32 : i32, i32, i32
  }
  func.func @transform_1(%arg0: i32, %arg1: i32) -> (i32, i32, i32) {
    %c0_i32 = arith.constant 0 : i32
    %c0_i32_0 = arith.constant 0 : i32
    %c0_i32_1 = arith.constant 0 : i32
    return %arg0, %c0_i32, %c0_i32_0 : i32, i32, i32
  }
  func.func @transform_2(%arg0: i32, %arg1: i32) -> (i32, i32, i32) {
    %c0_i32 = arith.constant 0 : i32
    %c0_i32_0 = arith.constant 0 : i32
    %c0_i32_1 = arith.constant 0 : i32
    return %arg0, %c0_i32, %c0_i32_0 : i32, i32, i32
  }
  func.func @transform_3(%arg0: i32, %arg1: i32) -> (i32, i32, i32) {
    %c0_i32 = arith.constant 0 : i32
    %c0_i32_0 = arith.constant 0 : i32
    return %arg0, %arg1, %c0_i32 : i32, i32, i32
  }
  func.func @transform_4(%arg0: i32, %arg1: i32) -> (i32, i32, i32) {
    %c0_i32 = arith.constant 0 : i32
    %c0_i32_0 = arith.constant 0 : i32
    return %arg0, %arg1, %c0_i32 : i32, i32, i32
  }
}

</mosaic_0001>

<bundles_post_ra>
// kernel: tpu_custom_call.1
= control target key start
LH: loop header
LB: loop body
LE: loop exit
PB: predicated region body
PF: predicated region fallthrough
CT: control target
= control target key end

     0   :  { %10 = vsyncpa [#allocation3], 0  ;;  %s1990_s0 = inlined_call_operand.hbm [shape: f32[8,8,32], index: 0, kind: input, shape index: {}]   ;;  %s1991_s1 = inlined_call_operand.hbm [shape: f32[8,8,32], index: 1, kind: input, shape index: {}]   ;;  %s1992_s2 = inlined_call_operand.hbm [shape: f32[8,8,32], index: 2, kind: input, shape index: {}]   ;;  %s1993_s3 = inlined_call_operand.hbm [shape: f32[8,8,32], index: 3, kind: output, shape index: {0}]   ;;  %s1994_s4 = inlined_call_operand.hbm [shape: f32[8,8,8], index: 4, kind: output, shape index: {1}]  }
   0x1   :  { %11 = vsyncpa [#allocation6], 0 }
   0x2   :  { %12 = vsyncpa [#allocation4], 0 }
   0x3   :  { %13 = vsyncpa [#allocation10], 0  ;;  %s1742_s15 = smov [#allocation5]   ;;  %s1743_s17 = smov [#allocation2]  }
   0x4   :  { %s31_s16 = sshll.u32 %s1742_s15, 4  ;;  %s19_s18 = sshll.u32 %s1743_s17, 4  ;;  %s32_s16 = int_to_ptr.vmem [resolvable:$true] %s31_s16  ;;  %s1776_s18 = int_to_ptr.vmem [resolvable:$true] %s19_s18 }
   0x5   :  { %s1624_s21 = scalar_lea.hbm %s1991_s1, 1024 }
   0x6   :  { %p1625_p0 = scmp.ne.s32.totalorder %s1991_s1, %s1624_s21  ;;  %p1628_p1 = scmp.lt.u32.totalorder %s1624_s21, %s1991_s1 }
   0x8   :  { %p1630_p2 = pnand %p1628_p1, %p1625_p0 }
   0xa   :  { %1633 = shalt.err (!%p1630_p2)
}
   0xb   :  { %s1634_s26 = scalar_lea.vmem %s32_s16, 1024  ;;  %p1639_p4 = scmp.lt.s32.totalorder %s32_s16, %s32_s16 }
   0xc   :  { %p1635_p3 = scmp.ne.s32.totalorder %s32_s16, %s1634_s26  ;;  %p1640_p5 = scmp.lt.s32.totalorder %s1634_s26, %s1634_s26 }
   0xe   :  { %p1641_p6 = por %p1640_p5, %p1639_p4 }
  0x10   :  { %p1642_p7 = pnand %p1641_p6, %p1635_p3 }
  0x12   :  { %1645 = shalt.err (!%p1642_p7)
}
  0x13   :  { %s1744_s27 = smov 128   ;;  %s1745_s28 = smov 8  }
  0x14   :  { %37 = dma.hbm_to_vmem [thread:$0]  %s1991_s1, 1024, %s32_s16, [#allocation6], %s1744_s27, %s1744_s27, %s1745_s28  }
  0x15   :  { %s1646_s7 = scalar_lea.hbm %s1990_s0, 1024 }
  0x16   :  { %p1647_p8 = scmp.ne.s32.totalorder %s1990_s0, %s1646_s7  ;;  %p1650_p9 = scmp.lt.u32.totalorder %s1646_s7, %s1990_s0 }
  0x18   :  { %p1652_p10 = pnand %p1650_p9, %p1647_p8 }
  0x1a   :  { %1655 = shalt.err (!%p1652_p10)
}
  0x1b   :  { %s1656_s12 = scalar_lea.vmem %s1776_s18, 1024  ;;  %p1661_p12 = scmp.lt.s32.totalorder %s1776_s18, %s1776_s18 }
  0x1c   :  { %p1657_p11 = scmp.ne.s32.totalorder %s1776_s18, %s1656_s12  ;;  %p1662_p13 = scmp.lt.s32.totalorder %s1656_s12, %s1656_s12 }
  0x1e   :  { %p1663_p0 = por %p1662_p13, %p1661_p12 }
  0x20   :  { %p1664_p1 = pnand %p1663_p0, %p1657_p11 }
  0x22   :  { %1667 = shalt.err (!%p1664_p1)
}
  0x23   :  { %25 = dma.hbm_to_vmem [thread:$0]  %s1990_s0, 1024, %s1776_s18, [#allocation3], %s1744_s27, %s1744_s27, %s1745_s28  }
  0x24   :  { %s1746_s14 = smov [#allocation7]   ;;  %s1668_s19 = scalar_lea.hbm %s1992_s2, 1024 }
  0x25   :  { %s43_s15 = sshll.u32 %s1746_s14, 4  ;;  %p1669_p2 = scmp.ne.s32.totalorder %s1992_s2, %s1668_s19  ;;  %s44_s15 = int_to_ptr.vmem [resolvable:$true] %s43_s15 }
  0x26   :  { %p1672_p3 = scmp.lt.u32.totalorder %s1668_s19, %s1992_s2 }
  0x28   :  { %p1674_p4 = pnand %p1672_p3, %p1669_p2 }
  0x2a   :  { %1677 = shalt.err (!%p1674_p4)
}
  0x2b   :  { %s1678_s24 = scalar_lea.vmem %s44_s15, 1024  ;;  %p1683_p6 = scmp.lt.s32.totalorder %s44_s15, %s44_s15 }
  0x2c   :  { %p1679_p5 = scmp.ne.s32.totalorder %s44_s15, %s1678_s24  ;;  %p1684_p7 = scmp.lt.s32.totalorder %s1678_s24, %s1678_s24 }
  0x2e   :  { %p1685_p8 = por %p1684_p7, %p1683_p6 }
  0x30   :  { %p1686_p9 = pnand %p1685_p8, %p1679_p5 }
  0x32   :  { %1689 = shalt.err (!%p1686_p9)
}
  0x33   :  { %49 = dma.hbm_to_vmem [thread:$0]  %s1992_s2, 1024, %s44_s15, [#allocation6], %s1744_s27, %s1744_s27, %s1745_s28  }
  0x34   :  { %1734 = dma.done.wait [#allocation3], 1024  }
  0x35   :  { %1735 = vsyncadd [#allocation3], 4294966272 }
  0x36   :  { %1736 = dma.done.wait [#allocation6], 2048  }
  0x37   :  { %1737 = vsyncadd [#allocation6], 4294965248  ;;  %v1747_v0 = vmov 0.0   ;;  %vm1748_vm0 = vmmov 0   ;;  %vm91_vm1 = vcmask 261120   ;;  %v75_v1 = vld [vmem:[#allocation5] sm:$0xff] }
  0x38   :  { %1503 = vmatprep.subr.mxu0 %v1747_v0  ;;  %1505 = vmatprep.mubr.msk.f32.mxu0 %vm1748_vm0, %v1747_v0  ;;  %v59_v2 = vld [vmem:[#allocation2] sm:$0xff]  ;;  %v76_v3 = vld [vmem:[#allocation5 + $0x8] sm:$0xff]  ;;  %v61_v6 = vld [vmem:[#allocation2 + $0x10] sm:$0xff]  ;;  %vm700_vm2 = vcmask 64512   ;;  %s1749_s2 = smov [#allocation9]  }
  0x39   :  { %1508 = vmatprep.subr.mxu1 %v1747_v0  ;;  %1510 = vmatprep.mubr.msk.f32.mxu1 %vm1748_vm0, %v1747_v0  ;;  %v67_v4 = vmul.f32 0.17677669, %v59_v2  ;;  %v60_v5 = vld [vmem:[#allocation2 + $0x8] sm:$0xff]  ;;  %v77_v7 = vld [vmem:[#allocation5 + $0x10] sm:$0xff]  ;;  %v78_v9 = vld [vmem:[#allocation5 + $0x18] sm:$0xff]  ;;  %s1430_s25 = sshll.u32 %s1749_s2, 4  ;;  %s1431_s25 = int_to_ptr.vmem [resolvable:$true] %s1430_s25 }
  0x3a   :  { %1504 = vmatpush3.xpose.msk.msra.mxu0 %vm91_vm1, %v75_v1  ;;  %1509 = vmatpush3.xpose.msk.msra.mxu1 %vm91_vm1, %v76_v3  ;;  %v68_v8 = vmul.f32 0.17677669, %v60_v5  ;;  %v62_v10 = vld [vmem:[#allocation2 + $0x18] sm:$0xff]  ;;  %v69_v11 = vmul.f32 0.17677669, %v61_v6  ;;  %v63_v12 = vld [vmem:[#allocation2 + $0x20] sm:$0xff]  ;;  %p1695_p11 = scmp.lt.s32.totalorder %s1431_s25, %s1431_s25 }
  0x3b   :  { %1513 = vmatprep.subr.mxu0 %v1747_v0  ;;  %1518 = vmatprep.subr.mxu1 %v1747_v0  ;;  %v79_v13 = vld [vmem:[#allocation5 + $0x20] sm:$0xff]  ;;  %v70_v14 = vmul.f32 0.17677669, %v62_v10  ;;  %v64_v15 = vld [vmem:[#allocation2 + $0x28] sm:$0xff]  ;;  %v71_v16 = vmul.f32 0.17677669, %v63_v12 }
  0x3c   :  { %v80_v17 = vld [vmem:[#allocation5 + $0x28] sm:$0xff]  ;;  %v65_v18 = vld [vmem:[#allocation2 + $0x30] sm:$0xff]  ;;  %v72_v20 = vmul.f32 0.17677669, %v64_v15  ;;  %v66_v21 = vld [vmem:[#allocation2 + $0x38] sm:$0xff]  ;;  %s1690_s26 = scalar_lea.vmem %s1431_s25, 1024 }
  0x3d   :  { %1506 = vmatmul.mubr.msk.f32.vlgmr.msra.gmra.mrb[0].mxu0 %vm91_vm1, %v67_v4  ;;  %1511 = vmatmul.mubr.msk.f32.vlgmr.msra.gmra.mrb[0].mxu1 %vm91_vm1, %v68_v8  ;;  %v81_v19 = vld [vmem:[#allocation5 + $0x30] sm:$0xff]  ;;  %v73_v22 = vmul.f32 0.17677669, %v65_v18  ;;  %v82_v23 = vld [vmem:[#allocation5 + $0x38] sm:$0xff]  ;;  %v74_v24 = vmul.f32 0.17677669, %v66_v21  ;;  %p1691_p10 = scmp.ne.s32.totalorder %s1431_s25, %s1690_s26  ;;  %p1696_p12 = scmp.lt.s32.totalorder %s1690_s26, %s1690_s26 }
  0x3e   :  { %1514 = vmatpush3.xpose.msk.msra.mxu0 %vm91_vm1, %v77_v7  ;;  %1515 = vmatprep.mubr.msk.f32.mxu0 %vm1748_vm0, %v1747_v0 }
  0x3f   :  { %1523 = vmatprep.subr.mxu0 %v1747_v0  ;;  %1519 = vmatpush3.xpose.msk.msra.mxu1 %vm91_vm1, %v78_v9  ;;  %p1697_p13 = por %p1696_p12, %p1695_p11 }
  0x40   :  { %1520 = vmatprep.mubr.msk.f32.mxu1 %vm1748_vm0, %v1747_v0  ;;  %1528 = vmatprep.subr.mxu1 %v1747_v0 }
  0x41   :  { %1516 = vmatmul.mubr.msk.f32.vlgmr.msra.gmra.mrb[2].mxu0 %vm91_vm1, %v69_v11  ;;  %p1698_p0 = pnand %p1697_p13, %p1691_p10 }
  0x42   :  { %1524 = vmatpush3.xpose.msk.msra.mxu0 %vm91_vm1, %v79_v13  ;;  %1525 = vmatprep.mubr.msk.f32.mxu0 %vm1748_vm0, %v1747_v0 }
  0x43   :  { %1521 = vmatmul.mubr.msk.f32.vlgmr.msra.gmra.mrb[2].mxu1 %vm91_vm1, %v70_v14  ;;  %1533 = vmatprep.subr.mxu0 %v1747_v0 }
  0x44   :  { %1529 = vmatpush3.xpose.msk.msra.mxu1 %vm91_vm1, %v80_v17  ;;  %1530 = vmatprep.mubr.msk.f32.mxu1 %vm1748_vm0, %v1747_v0 }
  0x45   :  { %1526 = vmatmul.mubr.msk.f32.vlgmr.msra.gmra.mrb[4].mxu0 %vm91_vm1, %v71_v16  ;;  %1538 = vmatprep.subr.mxu1 %v1747_v0 }
  0x46   :  { %1534 = vmatpush3.xpose.msk.msra.mxu0 %vm91_vm1, %v81_v19  ;;  %1535 = vmatprep.mubr.msk.f32.mxu0 %vm1748_vm0, %v1747_v0 }
  0x47   :  { %1531 = vmatmul.mubr.msk.f32.vlgmr.msra.gmra.mrb[4].mxu1 %vm91_vm1, %v72_v20  ;;  %1543 = vmatprep.subr.mxu0 %v1747_v0 }
  0x48   :  { %1539 = vmatpush3.xpose.msk.msra.mxu1 %vm91_vm1, %v82_v23  ;;  %1540 = vmatprep.mubr.msk.f32.mxu1 %vm1748_vm0, %v1747_v0 }
  0x49   :  { %1536 = vmatmul.mubr.msk.f32.vlgmr.msra.gmra.mrb[6].mxu0 %vm91_vm1, %v73_v22  ;;  %1548 = vmatprep.subr.mxu1 %v1747_v0 }
  0x4a   :  { %1545 = vmatprep.mubr.msk.f32.mxu0 %vm1748_vm0, %v1747_v0 }
  0x4b   :  { %1541 = vmatmul.mubr.msk.f32.vlgmr.msra.gmra.mrb[6].mxu1 %vm91_vm1, %v74_v24 }
  0x4c   :  { %1550 = vmatprep.mubr.msk.f32.mxu1 %vm1748_vm0, %v1747_v0 }
 0x110   :  { %v164_v25 = vpop.f32.mrb[0].mxu0  ;;  %v240_v26 = vpop.f32.mrb[0].mxu1 }
 0x111   :  { %v1507_v27 = vpop.f32.mrb[1].mxu0  ;;  %v701_v28 = vsel %vm700_vm2, %v164_v25, -inf  ;;  %v1512_v29 = vpop.f32.mrb[1].mxu1  ;;  %v704_v30 = vsel %vm700_vm2, %v240_v26, -inf }
 0x112   :  { %702 = vmax.xlane.f32.xlu0 %v701_v28  ;;  %v84_v27 = vld [vmem:[#allocation7 + $0x8] sm:$0xff] }
 0x113   :  { %1549 = vmatpush3.msra.mxu1 %v84_v27 }
 0x114   :  { %v316_v31 = vpop.f32.mrb[2].mxu0  ;;  %1558 = vmatprep.subr.mxu1 %v1747_v0 }
 0x115   :  { %v1517_v32 = vpop.f32.mrb[3].mxu0  ;;  %v707_v33 = vsel %vm700_vm2, %v316_v31, -inf }
 0x116   :  { %705 = vmax.xlane.f32.xlu0 %v704_v30  ;;  %708 = vmax.xlane.f32.xlu1 %v707_v33  ;;  %v392_v34 = vpop.f32.mrb[2].mxu1 }
 0x117   :  { %v1522_v35 = vpop.f32.mrb[3].mxu1  ;;  %v710_v36 = vsel %vm700_vm2, %v392_v34, -inf }
 0x118   :  { %v468_v37 = vpop.f32.mrb[4].mxu0 }
 0x119   :  { %v713_v38 = vsel %vm700_vm2, %v468_v37, -inf  ;;  %v1527_v39 = vpop.f32.mrb[5].mxu0 }
 0x11a   :  { %711 = vmax.xlane.f32.xlu1 %v710_v36  ;;  %714 = vmax.xlane.f32.xlu0 %v713_v38  ;;  %v544_v40 = vpop.f32.mrb[4].mxu1 }
 0x11b   :  { %v1532_v41 = vpop.f32.mrb[5].mxu1  ;;  %v716_v42 = vsel %vm700_vm2, %v544_v40, -inf }
 0x11c   :  { %v620_v43 = vpop.f32.mrb[6].mxu0 }
 0x11d   :  { %v719_v44 = vsel %vm700_vm2, %v620_v43, -inf  ;;  %v1537_v45 = vpop.f32.mrb[7].mxu0 }
 0x11e   :  { %717 = vmax.xlane.f32.xlu1 %v716_v42  ;;  %720 = vmax.xlane.f32.xlu0 %v719_v44  ;;  %v696_v46 = vpop.f32.mrb[6].mxu1 }
 0x11f   :  { %v1542_v47 = vpop.f32.mrb[7].mxu1  ;;  %v722_v48 = vsel %vm700_vm2, %v696_v46, -inf }
 0x122   :  { %723 = vmax.xlane.f32.xlu1 %v722_v48 }
 0x19f   :  { %v703_v49 = vpop.xlane.xlu0 %702 }
 0x1a0   :  { %v725_v50 = vsub.f32 %v164_v25, %v703_v49 }
 0x1a2   :  { %v733_v51 = vmul.f32 1.442695, %v725_v50 }
 0x1a3   :  { %v706_v52 = vpop.xlane.xlu0 %705  ;;  %v709_v53 = vpop.xlane.xlu1 %708 }
 0x1a4   :  { %1592 = vpow2.f32 %v733_v51  ;;  %v726_v54 = vsub.f32 %v240_v26, %v706_v52  ;;  %v727_v55 = vsub.f32 %v316_v31, %v709_v53  ;;  %v83_v26 = vld [vmem:[#allocation7] sm:$0xff] }
 0x1a5   :  { %1544 = vmatpush3.msra.mxu0 %v83_v26 }
 0x1a6   :  { %v735_v56 = vmul.f32 1.442695, %v726_v54  ;;  %v737_v57 = vmul.f32 1.442695, %v727_v55  ;;  %1553 = vmatprep.subr.mxu0 %v1747_v0 }
 0x1a7   :  { %v712_v58 = vpop.xlane.xlu1 %711  ;;  %v715_v59 = vpop.xlane.xlu0 %714 }
 0x1a8   :  { %1594 = vpow2.f32 %v735_v56  ;;  %v728_v60 = vsub.f32 %v392_v34, %v712_v58  ;;  %v729_v61 = vsub.f32 %v468_v37, %v715_v59  ;;  %v86_v56 = vld [vmem:[#allocation7 + $0x18] sm:$0xff] }
 0x1a9   :  { %1596 = vpow2.f32 %v737_v57 }
 0x1aa   :  { %v739_v62 = vmul.f32 1.442695, %v728_v60  ;;  %v741_v63 = vmul.f32 1.442695, %v729_v61  ;;  %v87_v60 = vld [vmem:[#allocation7 + $0x20] sm:$0xff] }
 0x1ab   :  { %v718_v1 = vpop.xlane.xlu1 %717  ;;  %v721_v2 = vpop.xlane.xlu0 %720 }
 0x1ac   :  { %1598 = vpow2.f32 %v739_v62  ;;  %v730_v3 = vsub.f32 %v544_v40, %v718_v1  ;;  %v731_v4 = vsub.f32 %v620_v43, %v721_v2 }
 0x1ad   :  { %1600 = vpow2.f32 %v741_v63 }
 0x1ae   :  { %v1593_v5 = vpop.eup %1592  ;;  %v743_v6 = vmul.f32 1.442695, %v730_v3  ;;  %v745_v7 = vmul.f32 1.442695, %v731_v4 }
 0x1af   :  { %v724_v8 = vpop.xlane.xlu1 %723  ;;  %v749_v9 = vsel %vm700_vm2, %v1593_v5, 0.0 }
 0x1b0   :  { %1602 = vpow2.f32 %v743_v6  ;;  %v732_v10 = vsub.f32 %v696_v46, %v724_v8  ;;  %750 = vadd.xlane.f32.xlu0 %v749_v9  ;;  %v85_v46 = vld [vmem:[#allocation7 + $0x10] sm:$0xff] }
 0x1b1   :  { %1604 = vpow2.f32 %v745_v7  ;;  %v89_v9 = vld [vmem:[#allocation7 + $0x30] sm:$0xff] }
 0x1b2   :  { %v1883_v11 = vpop.eup %1594  ;;  %v747_v12 = vmul.f32 1.442695, %v732_v10 }
 0x1b3   :  { %v1885_v13 = vpop.eup %1596  ;;  %v752_v14 = vsel %vm700_vm2, %v1883_v11, 0.0 }
 0x1b4   :  { %1606 = vpow2.f32 %v747_v12  ;;  %753 = vadd.xlane.f32.xlu1 %v752_v14  ;;  %v755_v15 = vsel %vm700_vm2, %v1885_v13, 0.0 }
 0x1b5   :  { %756 = vadd.xlane.f32.xlu0 %v755_v15  ;;  %v90_v15 = vld [vmem:[#allocation7 + $0x38] sm:$0xff] }
 0x1b6   :  { %v1891_v16 = vpop.eup %1598 }
 0x1b7   :  { %v1893_v17 = vpop.eup %1600  ;;  %v758_v18 = vsel %vm700_vm2, %v1891_v16, 0.0 }
 0x1b8   :  { %759 = vadd.xlane.f32.xlu1 %v758_v18  ;;  %v761_v19 = vsel %vm700_vm2, %v1893_v17, 0.0 }
 0x1b9   :  { %762 = vadd.xlane.f32.xlu0 %v761_v19 }
 0x1ba   :  { %v1899_v20 = vpop.eup %1602 }
 0x1bb   :  { %v1901_v21 = vpop.eup %1604  ;;  %v764_v22 = vsel %vm700_vm2, %v1899_v20, 0.0 }
 0x1bc   :  { %765 = vadd.xlane.f32.xlu1 %v764_v22  ;;  %v767_v23 = vsel %vm700_vm2, %v1901_v21, 0.0 }
 0x1bd   :  { %768 = vadd.xlane.f32.xlu0 %v767_v23 }
 0x1be   :  { %v1907_v24 = vpop.eup %1606 }
 0x1bf   :  { %v770_v25 = vsel %vm700_vm2, %v1907_v24, 0.0 }
 0x1c0   :  { %771 = vadd.xlane.f32.xlu1 %v770_v25 }
 0x23d   :  { %v751_v28 = vpop.xlane.xlu0 %750 }
 0x23e   :  { %1608 = vrcp.f32 %v751_v28 }
 0x241   :  { %v754_v29 = vpop.xlane.xlu1 %753 }
 0x242   :  { %1610 = vrcp.f32 %v754_v29  ;;  %v757_v30 = vpop.xlane.xlu0 %756 }
 0x243   :  { %1612 = vrcp.f32 %v757_v30 }
 0x245   :  { %v760_v31 = vpop.xlane.xlu1 %759 }
 0x246   :  { %1614 = vrcp.f32 %v760_v31  ;;  %v763_v32 = vpop.xlane.xlu0 %762 }
 0x247   :  { %1616 = vrcp.f32 %v763_v32 }
 0x248   :  { %v1609_v33 = vpop.eup %1608 }
 0x249   :  { %v781_v34 = vmul.f32 %v1609_v33, %v751_v28  ;;  %v766_v35 = vpop.xlane.xlu1 %765 }
 0x24a   :  { %1618 = vrcp.f32 %v766_v35  ;;  %v769_v36 = vpop.xlane.xlu0 %768 }
 0x24b   :  { %v789_v37 = vsub.f32 2.0, %v781_v34  ;;  %1620 = vrcp.f32 %v769_v36 }
 0x24c   :  { %v1611_v38 = vpop.eup %1610 }
 0x24d   :  { %v1613_v39 = vpop.eup %1612  ;;  %v797_v40 = vmul.f32 %v1609_v33, %v789_v37  ;;  %v782_v41 = vmul.f32 %v1611_v38, %v754_v29  ;;  %v772_v42 = vpop.xlane.xlu1 %771 }
 0x24e   :  { %v783_v43 = vmul.f32 %v1613_v39, %v757_v30  ;;  %1622 = vrcp.f32 %v772_v42 }
 0x24f   :  { %v805_v44 = vmul.f32 %v1593_v5, %v797_v40  ;;  %v790_v45 = vsub.f32 2.0, %v782_v41  ;;  %v88_v5 = vld [vmem:[#allocation7 + $0x28] sm:$0xff] }
 0x250   :  { %v1615_v47 = vpop.eup %1614  ;;  %v791_v48 = vsub.f32 2.0, %v783_v43 }
 0x251   :  { %v1617_v49 = vpop.eup %1616  ;;  %813 = vst.msk [vmem:[#allocation9] sm:$0xff] %vm700_vm2, %v805_v44  ;;  %v798_v50 = vmul.f32 %v1611_v38, %v790_v45  ;;  %v784_v51 = vmul.f32 %v1615_v47, %v760_v31  ;;  %1546 = vmatmul.mubr.msk.f32.vlgmr.msra.gmra.mrb[8].mxu0 %vm700_vm2, %v805_v44 }
 0x252   :  { %v799_v52 = vmul.f32 %v1613_v39, %v791_v48  ;;  %v785_v53 = vmul.f32 %v1617_v49, %v763_v32  ;;  %1554 = vmatpush3.msra.mxu0 %v85_v46  ;;  %1555 = vmatprep.mubr.msk.f32.mxu0 %vm1748_vm0, %v1747_v0 }
 0x253   :  { %v806_v54 = vmul.f32 %v1883_v11, %v798_v50  ;;  %v792_v55 = vsub.f32 2.0, %v784_v51  ;;  %1563 = vmatprep.subr.mxu0 %v1747_v0 }
 0x254   :  { %v1619_v57 = vpop.eup %1618  ;;  %v807_v58 = vmul.f32 %v1885_v13, %v799_v52  ;;  %v793_v59 = vsub.f32 2.0, %v785_v53 }
 0x255   :  { %v1621_v61 = vpop.eup %1620  ;;  %814 = vst.msk [vmem:[#allocation9 + $0x8] sm:$0xff] %vm700_vm2, %v806_v54  ;;  %v800_v62 = vmul.f32 %v1615_v47, %v792_v55  ;;  %v786_v63 = vmul.f32 %v1619_v57, %v766_v35  ;;  %1551 = vmatmul.mubr.msk.f32.vlgmr.msra.gmra.mrb[8].mxu1 %vm700_vm2, %v806_v54 }
 0x256   :  { %815 = vst.msk [vmem:[#allocation9 + $0x10] sm:$0xff] %vm700_vm2, %v807_v58  ;;  %v801_v1 = vmul.f32 %v1617_v49, %v793_v59  ;;  %v787_v2 = vmul.f32 %v1621_v61, %v769_v36  ;;  %1556 = vmatmul.mubr.msk.f32.vlgmr.msra.gmra.mrb[10].mxu0 %vm700_vm2, %v807_v58  ;;  %1559 = vmatpush3.msra.mxu1 %v86_v56 }
 0x257   :  { %v808_v3 = vmul.f32 %v1891_v16, %v800_v62  ;;  %v794_v4 = vsub.f32 2.0, %v786_v63  ;;  %1560 = vmatprep.mubr.msk.f32.mxu1 %vm1748_vm0, %v1747_v0  ;;  %1564 = vmatpush3.msra.mxu0 %v87_v60 }
 0x258   :  { %v1623_v6 = vpop.eup %1622  ;;  %v809_v7 = vmul.f32 %v1893_v17, %v801_v1  ;;  %v795_v8 = vsub.f32 2.0, %v787_v2  ;;  %1565 = vmatprep.mubr.msk.f32.mxu0 %vm1748_vm0, %v1747_v0  ;;  %1568 = vmatprep.subr.mxu1 %v1747_v0 }
 0x259   :  { %816 = vst.msk [vmem:[#allocation9 + $0x18] sm:$0xff] %vm700_vm2, %v808_v3  ;;  %v802_v10 = vmul.f32 %v1619_v57, %v794_v4  ;;  %v788_v11 = vmul.f32 %v1623_v6, %v772_v42  ;;  %1561 = vmatmul.mubr.msk.f32.vlgmr.msra.gmra.mrb[10].mxu1 %vm700_vm2, %v808_v3  ;;  %1573 = vmatprep.subr.mxu0 %v1747_v0 }
 0x25a   :  { %817 = vst.msk [vmem:[#allocation9 + $0x20] sm:$0xff] %vm700_vm2, %v809_v7  ;;  %v803_v12 = vmul.f32 %v1621_v61, %v795_v8  ;;  %1566 = vmatmul.mubr.msk.f32.vlgmr.msra.gmra.mrb[12].mxu0 %vm700_vm2, %v809_v7  ;;  %1569 = vmatpush3.msra.mxu1 %v88_v5 }
 0x25b   :  { %v810_v13 = vmul.f32 %v1899_v20, %v802_v10  ;;  %v796_v14 = vsub.f32 2.0, %v788_v11  ;;  %1570 = vmatprep.mubr.msk.f32.mxu1 %vm1748_vm0, %v1747_v0  ;;  %1574 = vmatpush3.msra.mxu0 %v89_v9 }
 0x25c   :  { %v811_v16 = vmul.f32 %v1901_v21, %v803_v12  ;;  %1575 = vmatprep.mubr.msk.f32.mxu0 %vm1748_vm0, %v1747_v0  ;;  %1578 = vmatprep.subr.mxu1 %v1747_v0 }
 0x25d   :  { %818 = vst.msk [vmem:[#allocation9 + $0x28] sm:$0xff] %vm700_vm2, %v810_v13  ;;  %v804_v17 = vmul.f32 %v1623_v6, %v796_v14  ;;  %1571 = vmatmul.mubr.msk.f32.vlgmr.msra.gmra.mrb[12].mxu1 %vm700_vm2, %v810_v13 }
 0x25e   :  { %819 = vst.msk [vmem:[#allocation9 + $0x30] sm:$0xff] %vm700_vm2, %v811_v16  ;;  %1576 = vmatmul.mubr.msk.f32.vlgmr.msra.gmra.mrb[14].mxu0 %vm700_vm2, %v811_v16  ;;  %1579 = vmatpush3.msra.mxu1 %v90_v15 }
 0x25f   :  { %v812_v18 = vmul.f32 %v1907_v24, %v804_v17  ;;  %1580 = vmatprep.mubr.msk.f32.mxu1 %vm1748_vm0, %v1747_v0 }
 0x261   :  { %820 = vst.msk [vmem:[#allocation9 + $0x38] sm:$0xff] %vm700_vm2, %v812_v18  ;;  %1581 = vmatmul.mubr.msk.f32.vlgmr.msra.gmra.mrb[14].mxu1 %vm700_vm2, %v812_v18 }
 0x262   :  { %1701 = shalt.err (!%p1698_p0)
}
 0x263   :  { %s1702_s5 = scalar_lea.hbm %s1994_s4, 1024 }
 0x264   :  { %p1703_p1 = scmp.ne.s32.totalorder %s1994_s4, %s1702_s5  ;;  %p1706_p2 = scmp.lt.u32.totalorder %s1702_s5, %s1994_s4 }
 0x266   :  { %p1708_p3 = pnand %p1706_p2, %p1703_p1 }
 0x268   :  { %1711 = shalt.err (!%p1708_p3)
}
 0x269   :  { %1436 = dma.vmem_to_hbm [thread:$0]  %s1431_s25, 1024, %s1994_s4, [#allocation10], %s1744_s27, %s1744_s27, %s1745_s28  }
 0x26a   :  { %s1750_s4 = smov [#allocation8]  }
 0x26b   :  { %s1418_s12 = sshll.u32 %s1750_s4, 4  ;;  %s1419_s12 = int_to_ptr.vmem [resolvable:$true] %s1418_s12 }
 0x26c   :  { %s1712_s1 = scalar_lea.vmem %s1419_s12, 1024  ;;  %p1717_p5 = scmp.lt.s32.totalorder %s1419_s12, %s1419_s12 }
 0x26d   :  { %p1713_p4 = scmp.ne.s32.totalorder %s1419_s12, %s1712_s1  ;;  %p1718_p6 = scmp.lt.s32.totalorder %s1712_s1, %s1712_s1 }
 0x26f   :  { %p1719_p7 = por %p1718_p6, %p1717_p5 }
 0x271   :  { %p1720_p8 = pnand %p1719_p7, %p1713_p4 }
 0x324   :  { %v890_v0 = vpop.f32.mrb[8].mxu0 }
 0x325   :  { %1405 = vst.msk [vmem:[#allocation8] sm:$0xff] %vm91_vm1, %v890_v0  ;;  %v1547_v19 = vpop.f32.mrb[9].mxu0 }
 0x328   :  { %v963_v20 = vpop.f32.mrb[8].mxu1 }
 0x329   :  { %1406 = vst.msk [vmem:[#allocation8 + $0x8] sm:$0xff] %vm91_vm1, %v963_v20  ;;  %v1036_v21 = vpop.f32.mrb[10].mxu0  ;;  %v1552_v22 = vpop.f32.mrb[9].mxu1 }
 0x32a   :  { %1407 = vst.msk [vmem:[#allocation8 + $0x10] sm:$0xff] %vm91_vm1, %v1036_v21  ;;  %v1557_v23 = vpop.f32.mrb[11].mxu0 }
 0x32c   :  { %v1109_v24 = vpop.f32.mrb[10].mxu1 }
 0x32d   :  { %1408 = vst.msk [vmem:[#allocation8 + $0x18] sm:$0xff] %vm91_vm1, %v1109_v24  ;;  %v1182_v25 = vpop.f32.mrb[12].mxu0  ;;  %v1562_v26 = vpop.f32.mrb[11].mxu1 }
 0x32e   :  { %1409 = vst.msk [vmem:[#allocation8 + $0x20] sm:$0xff] %vm91_vm1, %v1182_v25  ;;  %v1567_v27 = vpop.f32.mrb[13].mxu0 }
 0x330   :  { %v1255_v28 = vpop.f32.mrb[12].mxu1 }
 0x331   :  { %1410 = vst.msk [vmem:[#allocation8 + $0x28] sm:$0xff] %vm91_vm1, %v1255_v28  ;;  %v1328_v29 = vpop.f32.mrb[14].mxu0  ;;  %v1572_v30 = vpop.f32.mrb[13].mxu1 }
 0x332   :  { %1411 = vst.msk [vmem:[#allocation8 + $0x30] sm:$0xff] %vm91_vm1, %v1328_v29  ;;  %v1577_v31 = vpop.f32.mrb[15].mxu0 }
 0x334   :  { %v1401_v32 = vpop.f32.mrb[14].mxu1 }
 0x335   :  { %1412 = vst.msk [vmem:[#allocation8 + $0x38] sm:$0xff] %vm91_vm1, %v1401_v32  ;;  %v1582_v33 = vpop.f32.mrb[15].mxu1 }
 0x336   :  { %1723 = shalt.err (!%p1720_p8)
}
 0x337   :  { %s1724_s15 = scalar_lea.hbm %s1993_s3, 1024 }
 0x338   :  { %p1725_p9 = scmp.ne.s32.totalorder %s1993_s3, %s1724_s15  ;;  %p1728_p10 = scmp.lt.u32.totalorder %s1724_s15, %s1993_s3 }
 0x33a   :  { %p1730_p11 = pnand %p1728_p10, %p1725_p9 }
 0x33c   :  { %1733 = shalt.err (!%p1730_p11)
}
 0x33d   :  { %1424 = dma.vmem_to_hbm [thread:$0]  %s1419_s12, 1024, %s1993_s3, [#allocation4], %s1744_s27, %s1744_s27, %s1745_s28  }
 0x33e   :  { %1738 = dma.done.wait [#allocation4], 1024  }
 0x33f   :  { %1739 = vsyncadd [#allocation4], 4294966272 }
 0x340   :  { %1740 = dma.done.wait [#allocation10], 1024  }
 0x341   :  { %1741 = vsyncadd [#allocation10], 4294966272 }
 0x342   :  { %1443 = vsyncpa [#allocation3], 1 }
 0x343   :  { %1444 = vsyncpa [#allocation6], 1 }
 0x344   :  { %1445 = vsyncpa [#allocation4], 1 }
 0x345   :  { %1446 = vsyncpa [#allocation10], 1 }

</bundles_post_ra>
